<compile_context>
chip_gen: v6e
topology: v6e:2x2x1
jax: 0.10.0
libtpu: 0.0.40
codegen_flags: <defaults>
</compile_context>

<pallas_src>
import functools

import numpy as np

import jax
import jax.numpy as jnp
from jax.experimental import pallas as pl
from jax.experimental.pallas import tpu as pltpu


# --------------------------- static dimensions ----------------------------- #
C_OUT = 128
KH = KW = 4
H_IN, W_IN = 6, 7
H_OUT, W_OUT = H_IN - KH + 1, W_IN - KW + 1          # 3, 4
N_POS = H_OUT * W_OUT                                # 12
PATCH = KH * KW                                      # 16
IN_DIM = H_IN * W_IN                                 # 42
IN_AUG = IN_DIM + 1                                  # 43 (+ constant-1 bias col)
FLAT = C_OUT * N_POS                                 # 1536
HID = 128
N_ACTIONS = 7


# ----------------------------- Pallas kernel ------------------------------- #
def cnn_c_kernel(x_ref, wc_ref, w1_ref, b1_ref, w2_ref, b2_ref, w3_ref, b3_ref,
                 out_ref, *, act_dtype):
    # Conv2d(1,128,4) folded into one dense (43,1536) matmul (im2col baked into
    # the weight; last input column is constant 1 so the conv bias rides in the
    # last weight row -> MXU add, not VPU).  Output column order is c*12 + pos,
    # i.e. exactly PyTorch's flatten order of the (B,128,3,4) conv output.
    h = jnp.dot(x_ref[...], wc_ref[...], preferred_element_type=jnp.float32)
    h = h.astype(act_dtype)                   # bf16 on v6e/v7x, f32 on v5e
    h = jnp.maximum(h, h * 0.01)              # leaky_relu(0.01): mul + max only
    h = h.astype(jnp.bfloat16)                # no-op when act_dtype == bf16
    # TODO(synk): Dropout2d/Dropout are inference-mode identities (no RNG path).

    # fc1 + relu
    h = jnp.maximum(
        jnp.dot(h, w1_ref[...], preferred_element_type=jnp.float32)
        + b1_ref[...], 0.0).astype(jnp.bfloat16)

    # fc2 + relu
    h = jnp.maximum(
        jnp.dot(h, w2_ref[...], preferred_element_type=jnp.float32)
        + b2_ref[...], 0.0).astype(jnp.bfloat16)

    # fc3 (narrow 7-wide output; masked stores amortized over tile_b rows)
    out_ref[...] = (jnp.dot(h, w3_ref[...], preferred_element_type=jnp.float32)
                    + b3_ref[...])


# --------------------------- parameter handling ---------------------------- #
def init_params(key):
    """Deterministic parameters with PyTorch-layout shapes."""
    ks = jax.random.split(key, 8)

    def u(k, shape, fan_in):
        bound = 1.0 / jnp.sqrt(fan_in)
        return jax.random.uniform(k, shape, jnp.float32, -bound, bound)

    return {
        "conv_w": u(ks[0], (C_OUT, 1, KH, KW), PATCH),   # (128,1,4,4)
        "conv_b": u(ks[1], (C_OUT,), PATCH),
        "fc1_w": u(ks[2], (HID, FLAT), FLAT),            # (out,in) like torch
        "fc1_b": u(ks[3], (HID,), FLAT),
        "fc2_w": u(ks[4], (HID, HID), HID),
        "fc2_b": u(ks[5], (HID,), HID),
        "fc3_w": u(ks[6], (N_ACTIONS, HID), HID),
        "fc3_b": u(ks[7], (N_ACTIONS,), HID),
    }


def prepare_kernel_weights(p):
    """PyTorch-layout params -> bf16 matmul operands consumed by the kernel."""
    # Patch-gather tensor: P[input_idx, pos, k] = 1 iff flattened board index
    # `input_idx` is element k = kh*4+kw of the conv window at output pos.
    P = np.zeros((IN_DIM, N_POS, PATCH), np.float32)
    for oh in range(H_OUT):
        for ow in range(W_OUT):
            pos = oh * W_OUT + ow
            for kh in range(KH):
                for kw in range(KW):
                    P[(oh + kh) * W_IN + (ow + kw), pos, kh * KW + kw] = 1.0

    wc = np.asarray(p["conv_w"], np.float32).reshape(C_OUT, PATCH)   # (128,16)
    # Dense conv-as-matmul weight; output column index = c*12 + pos.
    wconv = np.einsum("ipk,ck->icp", P, wc).reshape(IN_DIM, FLAT)    # (42,1536)
    bconv = np.repeat(np.asarray(p["conv_b"], np.float32), N_POS)    # c-major
    wconv_aug = np.concatenate([wconv, bconv[None, :]], axis=0)      # (43,1536)

    bf16 = jnp.bfloat16
    return (
        jnp.asarray(wconv_aug, bf16),               # conv weight + bias row
        p["fc1_w"].T.astype(bf16),                  # (1536,128)
        p["fc1_b"][None, :],                        # (1,128) f32
        p["fc2_w"].T.astype(bf16),                  # (128,128)
        p["fc2_b"][None, :],                        # (1,128) f32
        p["fc3_w"].T.astype(bf16),                  # (128,7)
        p["fc3_b"][None, :],                        # (1,7) f32
    )


# ------------------------------ JAX wrapper -------------------------------- #
def _round_up(n, m):
    return ((n + m - 1) // m) * m


def _has_bf16_vpu():
    """bf16 VALU exists on v6e/v7x; keep the big epilogue in f32 on v5e/older."""
    try:
        kind = jax.devices()[0].device_kind.lower()
    except Exception:
        return False
    return not any(v in kind for v in ("v2", "v3", "v4", "v5"))


def cnn_c_forward(state, kernel_weights, *, max_tile_b=1024):
    """state: (B, 42) flattened 6x7 board -> (B, 7) action values (f32)."""
    b = state.shape[0]

    # bf16 board + constant-1 column (folds the conv bias into the matmul).
    x = jnp.concatenate(
        [state.astype(jnp.bfloat16), jnp.ones((b, 1), jnp.bfloat16)], axis=1)

    # Tile selection: multiple of 16 (bf16 sublane packing); capped at 1024 so
    # the working set stays well inside v7x's 64 MiB VMEM; >=2 grid steps for
    # batches >= 32 so both v7x TensorCores get work on the parallel axis.
    tile_b = min(max_tile_b, _round_up(b, 16))
    if b >= 32:
        tile_b = min(tile_b, _round_up(pl.cdiv(b, 2), 16))
    b_pad = _round_up(b, tile_b)
    if b_pad != b:
        x = jnp.pad(x, ((0, b_pad - b), (0, 0)))

    act_dt = jnp.bfloat16 if _has_bf16_vpu() else jnp.float32

    def batch_spec(feat):
        return pl.BlockSpec((tile_b, feat), lambda i: (i, 0))

    def resident(shape):                       # weights stay VMEM-resident
        return pl.BlockSpec(shape, lambda i: (0, 0))

    out = pl.pallas_call(
        functools.partial(cnn_c_kernel, act_dtype=act_dt),
        out_shape=jax.ShapeDtypeStruct((b_pad, N_ACTIONS), jnp.float32),
        grid=(b_pad // tile_b,),
        in_specs=[
            batch_spec(IN_AUG),                 # board tile (+1 bias column)
            resident((IN_AUG, FLAT)),           # conv weight (bias folded)
            resident((FLAT, HID)),              # fc1 w
            resident((1, HID)),                 # fc1 b
            resident((HID, HID)),               # fc2 w
            resident((1, HID)),                 # fc2 b
            resident((HID, N_ACTIONS)),         # fc3 w (narrow)
            resident((1, N_ACTIONS)),           # fc3 b
        ],
        out_specs=batch_spec(N_ACTIONS),
        compiler_params=pltpu.CompilerParams(
            dimension_semantics=("parallel",),
            vmem_limit_bytes=32 * 1024 * 1024),
    )(x, *kernel_weights)

    return out[:b] if b_pad != b else out


# -------------------------------- main ------------------------------------- #
if __name__ == "__main__":
    key = jax.random.PRNGKey(0)
    pkey, xkey = jax.random.split(key)

    params = init_params(pkey)
    kernel_weights = prepare_kernel_weights(params)

    batch = 8
    # state: (B, 42) = flattened 6x7 board, as implied by reshape(-1, 1, 6, 7)
    state = jax.random.normal(xkey, (batch, IN_DIM), jnp.float32)

    out = cnn_c_forward(state, kernel_weights)
    out = jax.block_until_ready(out)
    assert out.shape == (batch, N_ACTIONS) and out.dtype == jnp.float32
    assert bool(jnp.all(jnp.isfinite(out)))
    print("KERNEL_OK")
</pallas_src>

<mosaic_0001>
module attributes {stable_mosaic.version = 11 : i64} {
  func.func @cnn_c_kernel(%arg0: i32, %arg1: memref<16x43xbf16, #tpu.memory_space<vmem>>, %arg2: memref<43x1536xbf16, #tpu.memory_space<vmem>>, %arg3: memref<1536x128xbf16, #tpu.memory_space<vmem>>, %arg4: memref<1x128xf32, #tpu.memory_space<vmem>>, %arg5: memref<128x128xbf16, #tpu.memory_space<vmem>>, %arg6: memref<1x128xf32, #tpu.memory_space<vmem>>, %arg7: memref<128x7xbf16, #tpu.memory_space<vmem>>, %arg8: memref<1x7xf32, #tpu.memory_space<vmem>>, %arg9: memref<16x7xf32, #tpu.memory_space<vmem>>) attributes {dimension_semantics = [#tpu.dimension_semantics<parallel>], iteration_bounds = array<i64: 1>, scalar_prefetch = 0 : i64, scratch_operands = 0 : i64, tpu.core_type = #tpu.core_type<tc>, window_params = [{transform_indices = @transform_0, window_bounds = array<i64: 16, 43>}, {pipeline_mode = #tpu.pipeline_mode<synchronous>, transform_indices = @transform_1, window_bounds = array<i64: 43, 1536>}, {pipeline_mode = #tpu.pipeline_mode<synchronous>, transform_indices = @transform_2, window_bounds = array<i64: 1536, 128>}, {pipeline_mode = #tpu.pipeline_mode<synchronous>, transform_indices = @transform_3, window_bounds = array<i64: 1, 128>}, {pipeline_mode = #tpu.pipeline_mode<synchronous>, transform_indices = @transform_4, window_bounds = array<i64: 128, 128>}, {pipeline_mode = #tpu.pipeline_mode<synchronous>, transform_indices = @transform_5, window_bounds = array<i64: 1, 128>}, {pipeline_mode = #tpu.pipeline_mode<synchronous>, transform_indices = @transform_6, window_bounds = array<i64: 128, 7>}, {pipeline_mode = #tpu.pipeline_mode<synchronous>, transform_indices = @transform_7, window_bounds = array<i64: 1, 7>}, {transform_indices = @transform_8, window_bounds = array<i64: 16, 7>}]} {
    %c0 = arith.constant 0 : index
    %c0_0 = arith.constant 0 : index
    %0 = vector.load %arg1[%c0, %c0_0] : memref<16x43xbf16, #tpu.memory_space<vmem>>, vector<16x43xbf16>
    %c0_1 = arith.constant 0 : index
    %c0_2 = arith.constant 0 : index
    %1 = vector.load %arg2[%c0_1, %c0_2] : memref<43x1536xbf16, #tpu.memory_space<vmem>>, vector<43x1536xbf16>
    %cst = arith.constant dense<0.000000e+00> : vector<16x1536xf32>
    %2 = tpu.matmul %0, %1, %cst {dimension_numbers = #tpu.dot_dimension_numbers<[1], [0], [0], [1], [0, 0, 1, 1], [], []>} : vector<16x43xbf16>, vector<43x1536xbf16>, vector<16x1536xf32> -> vector<16x1536xf32>
    %3 = arith.truncf %2 : vector<16x1536xf32> to vector<16x1536xbf16>
    %cst_3 = arith.constant 1.000980e-02 : bf16
    %4 = vector.broadcast %cst_3 : bf16 to vector<16x1536xbf16>
    %5 = arith.mulf %3, %4 : vector<16x1536xbf16>
    %6 = arith.maximumf %3, %5 : vector<16x1536xbf16>
    %c0_4 = arith.constant 0 : index
    %c0_5 = arith.constant 0 : index
    %7 = vector.load %arg3[%c0_4, %c0_5] : memref<1536x128xbf16, #tpu.memory_space<vmem>>, vector<1536x128xbf16>
    %cst_6 = arith.constant dense<0.000000e+00> : vector<16x128xf32>
    %8 = tpu.matmul %6, %7, %cst_6 {dimension_numbers = #tpu.dot_dimension_numbers<[1], [0], [0], [1], [0, 0, 1, 1], [], []>} : vector<16x1536xbf16>, vector<1536x128xbf16>, vector<16x128xf32> -> vector<16x128xf32>
    %c0_7 = arith.constant 0 : index
    %c0_8 = arith.constant 0 : index
    %9 = vector.load %arg4[%c0_7, %c0_8] : memref<1x128xf32, #tpu.memory_space<vmem>>, vector<1x128xf32>
    %10 = vector.broadcast %9 : vector<1x128xf32> to vector<16x128xf32>
    %11 = arith.addf %8, %10 : vector<16x128xf32>
    %cst_9 = arith.constant 0.000000e+00 : f32
    %12 = vector.broadcast %cst_9 : f32 to vector<16x128xf32>
    %13 = arith.maximumf %11, %12 : vector<16x128xf32>
    %14 = arith.truncf %13 : vector<16x128xf32> to vector<16x128xbf16>
    %c0_10 = arith.constant 0 : index
    %c0_11 = arith.constant 0 : index
    %15 = vector.load %arg5[%c0_10, %c0_11] : memref<128x128xbf16, #tpu.memory_space<vmem>>, vector<128x128xbf16>
    %cst_12 = arith.constant dense<0.000000e+00> : vector<16x128xf32>
    %16 = tpu.matmul %14, %15, %cst_12 {dimension_numbers = #tpu.dot_dimension_numbers<[1], [0], [0], [1], [0, 0, 1, 1], [], []>} : vector<16x128xbf16>, vector<128x128xbf16>, vector<16x128xf32> -> vector<16x128xf32>
    %c0_13 = arith.constant 0 : index
    %c0_14 = arith.constant 0 : index
    %17 = vector.load %arg6[%c0_13, %c0_14] : memref<1x128xf32, #tpu.memory_space<vmem>>, vector<1x128xf32>
    %18 = vector.broadcast %17 : vector<1x128xf32> to vector<16x128xf32>
    %19 = arith.addf %16, %18 : vector<16x128xf32>
    %cst_15 = arith.constant 0.000000e+00 : f32
    %20 = vector.broadcast %cst_15 : f32 to vector<16x128xf32>
    %21 = arith.maximumf %19, %20 : vector<16x128xf32>
    %22 = arith.truncf %21 : vector<16x128xf32> to vector<16x128xbf16>
    %c0_16 = arith.constant 0 : index
    %c0_17 = arith.constant 0 : index
    %23 = vector.load %arg7[%c0_16, %c0_17] : memref<128x7xbf16, #tpu.memory_space<vmem>>, vector<128x7xbf16>
    %cst_18 = arith.constant dense<0.000000e+00> : vector<16x7xf32>
    %24 = tpu.matmul %22, %23, %cst_18 {dimension_numbers = #tpu.dot_dimension_numbers<[1], [0], [0], [1], [0, 0, 1, 1], [], []>} : vector<16x128xbf16>, vector<128x7xbf16>, vector<16x7xf32> -> vector<16x7xf32>
    %c0_19 = arith.constant 0 : index
    %c0_20 = arith.constant 0 : index
    %25 = vector.load %arg8[%c0_19, %c0_20] : memref<1x7xf32, #tpu.memory_space<vmem>>, vector<1x7xf32>
    %26 = vector.broadcast %25 : vector<1x7xf32> to vector<16x7xf32>
    %27 = arith.addf %24, %26 : vector<16x7xf32>
    %c0_21 = arith.constant 0 : index
    %c0_22 = arith.constant 0 : index
    %28 = vector.load %arg9[%c0_21, %c0_22] : memref<16x7xf32, #tpu.memory_space<vmem>>, vector<16x7xf32>
    tpu.vector_store %arg9[%c0_21, %c0_22], %27 {strides = array<i32>} : memref<16x7xf32, #tpu.memory_space<vmem>>, vector<16x7xf32>,
    return
  }
  func.func @transform_0(%arg0: i32) -> (i32, i32) {
    %c0_i32 = arith.constant 0 : i32
    %c0_i32_0 = arith.constant 0 : i32
    return %arg0, %c0_i32 : i32, i32
  }
  func.func @transform_1(%arg0: i32) -> (i32, i32) {
    %c0_i32 = arith.constant 0 : i32
    %c0_i32_0 = arith.constant 0 : i32
    %c0_i32_1 = arith.constant 0 : i32
    return %c0_i32, %c0_i32_0 : i32, i32
  }
  func.func @transform_2(%arg0: i32) -> (i32, i32) {
    %c0_i32 = arith.constant 0 : i32
    %c0_i32_0 = arith.constant 0 : i32
    %c0_i32_1 = arith.constant 0 : i32
    return %c0_i32, %c0_i32_0 : i32, i32
  }
  func.func @transform_3(%arg0: i32) -> (i32, i32) {
    %c0_i32 = arith.constant 0 : i32
    %c0_i32_0 = arith.constant 0 : i32
    %c0_i32_1 = arith.constant 0 : i32
    return %c0_i32, %c0_i32_0 : i32, i32
  }
  func.func @transform_4(%arg0: i32) -> (i32, i32) {
    %c0_i32 = arith.constant 0 : i32
    %c0_i32_0 = arith.constant 0 : i32
    %c0_i32_1 = arith.constant 0 : i32
    return %c0_i32, %c0_i32_0 : i32, i32
  }
  func.func @transform_5(%arg0: i32) -> (i32, i32) {
    %c0_i32 = arith.constant 0 : i32
    %c0_i32_0 = arith.constant 0 : i32
    %c0_i32_1 = arith.constant 0 : i32
    return %c0_i32, %c0_i32_0 : i32, i32
  }
  func.func @transform_6(%arg0: i32) -> (i32, i32) {
    %c0_i32 = arith.constant 0 : i32
    %c0_i32_0 = arith.constant 0 : i32
    %c0_i32_1 = arith.constant 0 : i32
    return %c0_i32, %c0_i32_0 : i32, i32
  }
  func.func @transform_7(%arg0: i32) -> (i32, i32) {
    %c0_i32 = arith.constant 0 : i32
    %c0_i32_0 = arith.constant 0 : i32
    %c0_i32_1 = arith.constant 0 : i32
    return %c0_i32, %c0_i32_0 : i32, i32
  }
  func.func @transform_8(%arg0: i32) -> (i32, i32) {
    %c0_i32 = arith.constant 0 : i32
    %c0_i32_0 = arith.constant 0 : i32
    return %arg0, %c0_i32 : i32, i32
  }
}

</mosaic_0001>

<bundles_post_ra>
// kernel: tpu_custom_call.1
= control target key start
LH: loop header
LB: loop body
LE: loop exit
PB: predicated region body
PF: predicated region fallthrough
CT: control target
= control target key end

     0   :  { %13 = vsyncpa [#allocation3], 0  ;;  %s2667_s0 = inlined_call_operand.vmem [shape: bf16[16,43], index: 0, kind: input, shape index: {}]   ;;  %s2668_s1 = inlined_call_operand.hbm [shape: bf16[43,1536], index: 1, kind: input, shape index: {}]   ;;  %s2669_s2 = inlined_call_operand.hbm [shape: bf16[1536,128], index: 2, kind: input, shape index: {}]   ;;  %s2670_s3 = inlined_call_operand.vmem [shape: f32[1,128], index: 3, kind: input, shape index: {}]   ;;  %s2671_s4 = inlined_call_operand.vmem [shape: bf16[128,128], index: 4, kind: input, shape index: {}]   ;;  %s2672_s5 = inlined_call_operand.hbm [shape: f32[1,128], index: 5, kind: input, shape index: {}]   ;;  %s2673_s6 = inlined_call_operand.vmem [shape: bf16[128,7], index: 6, kind: input, shape index: {}]   ;;  %s2674_s7 = inlined_call_operand.vmem [shape: f32[1,7], index: 7, kind: input, shape index: {}]   ;;  %s2675_s8 = inlined_call_operand.vmem [shape: f32[16,7], index: 8, kind: output, shape index: {}]  }
   0x1   :  { %14 = vsyncpa [#allocation5], 0  ;;  %s2469_s27 = smov [#allocation4]  }
   0x2   :  { %s34_s28 = sshll.u32 %s2469_s27, 4  ;;  %s35_s28 = int_to_ptr.vmem [resolvable:$true] %s34_s28 }
   0x3   :  { %s2413_s29 = scalar_lea.vmem %s35_s28, 12288  ;;  %p2418_p1 = scmp.lt.s32.totalorder %s35_s28, %s35_s28 }
   0x4   :  { %p2414_p0 = scmp.ne.s32.totalorder %s35_s28, %s2413_s29  ;;  %p2419_p2 = scmp.lt.s32.totalorder %s2413_s29, %s2413_s29 }
   0x6   :  { %p2420_p3 = por %p2419_p2, %p2418_p1 }
   0x8   :  { %p2421_p4 = pnand %p2420_p3, %p2414_p0 }
   0xa   :  { %2424 = shalt.err (!%p2421_p4)
}
   0xb   :  { %s2470_s30 = smov 64   ;;  %s2471_s9 = smov 4  }
   0xc   :  { %40 = dma.hbm_to_vmem [thread:$0]  %s2669_s2, 12288, %s35_s28, [#allocation5], %s2470_s30, %s2470_s30, %s2471_s9  }
   0xd   :  { %s2472_s12 = smov [#allocation2]  }
   0xe   :  { %s22_s13 = sshll.u32 %s2472_s12, 4  ;;  %s23_s13 = int_to_ptr.vmem [resolvable:$true] %s22_s13 }
   0xf   :  { %s2433_s14 = scalar_lea.vmem %s23_s13, 4608  ;;  %p2438_p6 = scmp.lt.s32.totalorder %s23_s13, %s23_s13 }
  0x10   :  { %p2434_p5 = scmp.ne.s32.totalorder %s23_s13, %s2433_s14  ;;  %p2439_p7 = scmp.lt.s32.totalorder %s2433_s14, %s2433_s14 }
  0x12   :  { %p2440_p8 = por %p2439_p7, %p2438_p6 }
  0x14   :  { %p2441_p9 = pnand %p2440_p8, %p2434_p5 }
  0x16   :  { %2444 = shalt.err (!%p2441_p9)
}
  0x17   :  { %s2473_s15 = smov 768   ;;  %s2474_s16 = smov 48  }
  0x18   :  { %28 = dma.hbm_to_vmem [thread:$0]  %s2668_s1, 4608, %s23_s13, [#allocation3], %s2473_s15, %s2473_s15, %s2474_s16  }
  0x19   :  { %s2475_s19 = smov [#allocation6]  }
  0x1a   :  { %s51_s20 = sshll.u32 %s2475_s19, 4  ;;  %s52_s20 = int_to_ptr.vmem [resolvable:$true] %s51_s20 }
  0x1b   :  { %s2453_s2 = scalar_lea.vmem %s52_s20, 16  ;;  %s2457_s21 = scalar_lea.vmem %s52_s20, 32 }
  0x1c   :  { %p2454_p10 = scmp.ne.s32.totalorder %s52_s20, %s2453_s2  ;;  %p2458_p11 = scmp.lt.s32.totalorder %s52_s20, %s52_s20 }
  0x1d   :  { %p2459_p12 = scmp.lt.s32.totalorder %s2457_s21, %s2453_s2 }
  0x1f   :  { %p2460_p13 = por %p2459_p12, %p2458_p11 }
  0x21   :  { %p2461_p0 = pnand %p2460_p13, %p2454_p10 }
  0x23   :  { %2464 = shalt.err (!%p2461_p0)
}
  0x24   :  { %54 = dma.hbm_to_vmem [thread:$0]  %s2672_s5, 16, %s52_s20, [#allocation5]  }
  0x25   :  { %2465 = dma.done.wait [#allocation3], 4608  }
  0x26   :  { %2466 = vsyncadd [#allocation3], 4294962688 }
  0x27   :  { %2467 = dma.done.wait [#allocation5], 12304  }
  0x28   :  { %2468 = vsyncadd [#allocation5], 4294954992  ;;  %vm285_vm0 = vcmask 1044480   ;;  %v2476_v0 = vmov 0   ;;  %vm286_vm1 = vcmask 1045504   ;;  %v2477_v1 = vmov 65535  }
  0x29   :  { %357 = vmatprep.mubr.bf16.mxu0 %v2476_v0  ;;  %400 = vmatprep.mubr.bf16.mxu1 %v2476_v0  ;;  %v287_v2 = vsel %vm285_vm0, 4294967295, %v2477_v1  ;;  %v2238_v4 = vld [vmem:[#allocation2 + $0xc4] ss:$48 sps:$4 sm:$0x3f]   ;;  %v2246_v13 = vld [vmem:[#allocation2 + $0x6c] ss:$48 sps:$4 sm:$0xff]  }
  0x2a   :  { %v2536_v3 = vsel %vm286_vm1, %v287_v2, 0  ;;  %v2240_v5 = vld [vmem:[#allocation2 + $0xcc] ss:$48 sps:$4 sm:$0x3f]   ;;  %v2244_v10 = vld [vmem:[#allocation2 + $0x64] ss:$48 sps:$4 sm:$0xff]  }
  0x2b   :  { %v293_v6 = vand.u32 %v2238_v4, %v2536_v3  ;;  %v2242_v7 = vld [vmem:[#allocation2 + $0xc0] ss:$48 sps:$4 sm:$0x3f]   ;;  %v2243_v8 = vld [vmem:[#allocation2 + $0xc8] ss:$48 sps:$4 sm:$0x3f]   ;;  %v299_v9 = vand.u32 %v2240_v5, %v2536_v3 }
  0x2c   :  { %v290_v11 = vand.u32 %v2242_v7, %v2536_v3  ;;  %v296_v12 = vand.u32 %v2243_v8, %v2536_v3  ;;  %v2248_v14 = vld [vmem:[#allocation2 + $0x60] ss:$48 sps:$4 sm:$0xff]   ;;  %v2249_v15 = vld [vmem:[#allocation2 + $0x68] ss:$48 sps:$4 sm:$0xff]   ;;  %v2250_v16 = vld [vmem:[#allocation2 + $0x4] ss:$48 sps:$4 sm:$0xff]  }
  0x2d   :  { %335 = vmatprep.subr.bf16.mxu0 %v293_v6  ;;  %378 = vmatprep.subr.bf16.mxu1 %v299_v9  ;;  %v2252_v17 = vld [vmem:[#allocation2 + $0xc] ss:$48 sps:$4 sm:$0xff]   ;;  %v2254_v18 = vld [vmem:[#allocation2] ss:$48 sps:$4 sm:$0xff]   ;;  %v2255_v19 = vld [vmem:[#allocation2 + $0x8] ss:$48 sps:$4 sm:$0xff]  }
  0x2e   :  { %336 = vmatpush1.bf16.msra.mxu0 %v290_v11  ;;  %379 = vmatpush1.bf16.msra.mxu1 %v296_v12  ;;  %v2257_v20 = vld [vmem:[#allocation2 + $0xd0] ss:$48 sps:$4 sm:$0x3f]   ;;  %v2259_v21 = vld [vmem:[#allocation2 + $0xd4] ss:$48 sps:$4 sm:$0x3f]  }
  0x2f   :  { %337 = vmatprep.subr.bf16.mxu0 %v2244_v10  ;;  %380 = vmatprep.subr.bf16.mxu1 %v2246_v13  ;;  %v2260_v22 = vld [vmem:[#allocation2 + $0xd8] ss:$48 sps:$4 sm:$0x3f]   ;;  %v305_v23 = vand.u32 %v2259_v21, %v2536_v3  ;;  %v2262_v24 = vld [vmem:[#allocation2 + $0xdc] ss:$48 sps:$4 sm:$0x3f]   ;;  %v302_v26 = vand.u32 %v2257_v20, %v2536_v3 }
  0x30   :  { %v2546_v25 = vld [vmem:[%s2667_s0] sm:$0xff]   ;;  %vm281_vm2 = vcmask 351232   ;;  %v311_v27 = vand.u32 %v2262_v24, %v2536_v3  ;;  %v308_v28 = vand.u32 %v2260_v22, %v2536_v3  ;;  %v2268_v30 = vld [vmem:[#allocation2 + $0x7c] ss:$48 sps:$4 sm:$0xff]   ;;  %v2266_v32 = vld [vmem:[#allocation2 + $0x78] ss:$48 sps:$4 sm:$0xff]  }
  0x31   :  { %v2265_v29 = vld [vmem:[#allocation2 + $0x74] ss:$48 sps:$4 sm:$0xff]   ;;  %v2263_v31 = vld [vmem:[#allocation2 + $0x70] ss:$48 sps:$4 sm:$0xff]   ;;  %v2274_v34 = vld [vmem:[#allocation2 + $0x1c] ss:$48 sps:$4 sm:$0xff]  }
  0x32   :  { %338 = vmatpush1.bf16.msra.mxu0 %v2248_v14  ;;  %381 = vmatpush1.bf16.msra.mxu1 %v2249_v15  ;;  %v2271_v33 = vld [vmem:[#allocation2 + $0x14] ss:$48 sps:$4 sm:$0xff]   ;;  %v2269_v36 = vld [vmem:[#allocation2 + $0x10] ss:$48 sps:$4 sm:$0xff]   ;;  %v2272_v38 = vld [vmem:[#allocation2 + $0x18] ss:$48 sps:$4 sm:$0xff]  }
  0x33   :  { %339 = vmatprep.subr.bf16.mxu0 %v2250_v16  ;;  %382 = vmatprep.subr.bf16.mxu1 %v2252_v17  ;;  %v2277_v35 = vld [vmem:[#allocation2 + $0xe4] ss:$48 sps:$4 sm:$0x3f]   ;;  %v2280_v37 = vld [vmem:[#allocation2 + $0xec] ss:$48 sps:$4 sm:$0x3f]  }
  0x34   :  { %v2275_v39 = vld [vmem:[#allocation2 + $0xe0] ss:$48 sps:$4 sm:$0x3f]   ;;  %v2278_v40 = vld [vmem:[#allocation2 + $0xe8] ss:$48 sps:$4 sm:$0x3f]   ;;  %v317_v41 = vand.u32 %v2277_v35, %v2536_v3  ;;  %v323_v42 = vand.u32 %v2280_v37, %v2536_v3 }
  0x35   :  { %v314_v43 = vand.u32 %v2275_v39, %v2536_v3  ;;  %v320_v44 = vand.u32 %v2278_v40, %v2536_v3  ;;  %v2283_v45 = vld [vmem:[#allocation2 + $0x84] ss:$48 sps:$4 sm:$0xff]   ;;  %v2286_v46 = vld [vmem:[#allocation2 + $0x8c] ss:$48 sps:$4 sm:$0xff]   ;;  %v2281_v47 = vld [vmem:[#allocation2 + $0x80] ss:$48 sps:$4 sm:$0xff]  }
  0x36   :  { %340 = vmatpush1.bf16.msra.mxu0 %v2254_v18  ;;  %383 = vmatpush1.bf16.msra.mxu1 %v2255_v19  ;;  %v2284_v48 = vld [vmem:[#allocation2 + $0x88] ss:$48 sps:$4 sm:$0xff]   ;;  %v2289_v49 = vld [vmem:[#allocation2 + $0x24] ss:$48 sps:$4 sm:$0xff]   ;;  %v2292_v50 = vld [vmem:[#allocation2 + $0x2c] ss:$48 sps:$4 sm:$0xff]  }
  0x37   :  { %421 = vmatprep.subr.bf16.mxu0 %v305_v23  ;;  %464 = vmatprep.subr.bf16.mxu1 %v311_v27  ;;  %v2287_v51 = vld [vmem:[#allocation2 + $0x20] ss:$48 sps:$4 sm:$0xff]   ;;  %v2290_v52 = vld [vmem:[#allocation2 + $0x28] ss:$48 sps:$4 sm:$0xff]   ;;  %vm2479_vm3 = vmmov 0   ;;  %vm1870_vm4 = vcmask 56320  }
  0x38   :  { %v2293_v53 = vld [vmem:[#allocation4 + $0x78] sm:$0xff]   ;;  %v2297_v57 = vld [vmem:[#allocation4 + $0x70] sm:$0xff]   ;;  %v2301_v61 = vld [vmem:[#allocation4 + $0x68] sm:$0xff]  }
  0x39   :  { %1916 = vmatmul.mubr.msk.bf16.vlgmr.msra.gmra.mxu0 %vm281_vm2, %v2546_v25  ;;  %1917 = vmatmul.mubr.msk.bf16.vlgmr.msra.gmra.mxu1 %vm281_vm2, %v2546_v25  ;;  %v2294_v54 = vld [vmem:[#allocation4 + $0xf8] sm:$0xff]   ;;  %v2298_v58 = vld [vmem:[#allocation4 + $0xf0] sm:$0xff]   ;;  %v2302_v62 = vld [vmem:[#allocation4 + $0xe8] sm:$0xff]  }
  0x3a   :  { %422 = vmatpush1.bf16.msra.mxu0 %v302_v26  ;;  %465 = vmatpush1.bf16.msra.mxu1 %v308_v28  ;;  %v2295_v55 = vld [vmem:[#allocation4 + $0x38] sm:$0xff]   ;;  %v2299_v59 = vld [vmem:[#allocation4 + $0x30] sm:$0xff]   ;;  %v2303_v63 = vld [vmem:[#allocation4 + $0x28] sm:$0xff]  }
  0x3b   :  { %423 = vmatprep.subr.bf16.mxu0 %v2265_v29  ;;  %466 = vmatprep.subr.bf16.mxu1 %v2268_v30  ;;  %v2296_v56 = vld [vmem:[#allocation4 + $0xb8] sm:$0xff]   ;;  %v2300_v60 = vld [vmem:[#allocation4 + $0xb0] sm:$0xff]   ;;  %v2305_v1 = vld [vmem:[#allocation4 + $0x60] sm:$0xff]  }
  0x3c   :  { %443 = vmatprep.mubr.bf16.mxu0 %v2476_v0  ;;  %486 = vmatprep.mubr.bf16.mxu1 %v2476_v0  ;;  %v2306_v2 = vld [vmem:[#allocation4 + $0xe0] sm:$0xff]   ;;  %v2309_v5 = vld [vmem:[#allocation4 + $0x58] sm:$0xff]   ;;  %v2313_v9 = vld [vmem:[#allocation4 + $0x50] sm:$0xff]  }
  0x3d   :  { %v2307_v3 = vld [vmem:[#allocation4 + $0x20] sm:$0xff]   ;;  %v2310_v6 = vld [vmem:[#allocation4 + $0xd8] sm:$0xff]   ;;  %v2314_v10 = vld [vmem:[#allocation4 + $0xd0] sm:$0xff]  }
  0x3e   :  { %424 = vmatpush1.bf16.msra.mxu0 %v2263_v31  ;;  %467 = vmatpush1.bf16.msra.mxu1 %v2266_v32  ;;  %v2308_v4 = vld [vmem:[#allocation4 + $0xa0] sm:$0xff]   ;;  %v2311_v7 = vld [vmem:[#allocation4 + $0x18] sm:$0xff]   ;;  %v2315_v11 = vld [vmem:[#allocation4 + $0x10] sm:$0xff]  }
  0x3f   :  { %425 = vmatprep.subr.bf16.mxu0 %v2271_v33  ;;  %468 = vmatprep.subr.bf16.mxu1 %v2274_v34  ;;  %v2312_v8 = vld [vmem:[#allocation4 + $0x98] sm:$0xff]   ;;  %v2316_v12 = vld [vmem:[#allocation4 + $0x90] sm:$0xff]   ;;  %v2317_v13 = vld [vmem:[#allocation4 + $0x48] sm:$0xff]  }
  0x40   :  { %v2318_v14 = vld [vmem:[#allocation4 + $0xc8] sm:$0xff]   ;;  %v2321_v17 = vld [vmem:[#allocation4 + $0x40] sm:$0xff]   ;;  %v2325_v21 = vld [vmem:[#allocation4 + $0x178] sm:$0xff]  }
  0x41   :  { %v2319_v15 = vld [vmem:[#allocation4 + $0x8] sm:$0xff]   ;;  %v2322_v18 = vld [vmem:[#allocation4 + $0xc0] sm:$0xff]   ;;  %v2326_v22 = vld [vmem:[#allocation4 + $0x1f8] sm:$0xff]  }
  0x42   :  { %426 = vmatpush1.bf16.msra.mxu0 %v2269_v36  ;;  %469 = vmatpush1.bf16.msra.mxu1 %v2272_v38  ;;  %v2320_v16 = vld [vmem:[#allocation4 + $0x88] sm:$0xff]   ;;  %v2323_v19 = vld [vmem:[#allocation4] sm:$0xff]  }
  0x43   :  { %507 = vmatprep.subr.bf16.mxu0 %v317_v41  ;;  %550 = vmatprep.subr.bf16.mxu1 %v323_v42  ;;  %v2324_v20 = vld [vmem:[#allocation4 + $0x80] sm:$0xff]   ;;  %v2327_v41 = vld [vmem:[#allocation4 + $0x138] sm:$0xff]  }
  0x44   :  { %v2328_v42 = vld [vmem:[#allocation4 + $0x1b8] sm:$0xff]  }
  0x45   :  { %1918 = vmatmul.mubr.msk.bf16.vlgmr.msra.gmra.mxu0 %vm281_vm2, %v2546_v25  ;;  %1919 = vmatmul.mubr.msk.bf16.vlgmr.msra.gmra.mxu1 %vm281_vm2, %v2546_v25 }
  0x46   :  { %508 = vmatpush1.bf16.msra.mxu0 %v314_v43  ;;  %551 = vmatpush1.bf16.msra.mxu1 %v320_v44 }
  0x47   :  { %509 = vmatprep.subr.bf16.mxu0 %v2283_v45  ;;  %552 = vmatprep.subr.bf16.mxu1 %v2286_v46  ;;  %v2329_v45 = vld [vmem:[#allocation4 + $0x170] sm:$0xff]  }
  0x48   :  { %529 = vmatprep.mubr.bf16.mxu0 %v2476_v0  ;;  %572 = vmatprep.mubr.bf16.mxu1 %v2476_v0  ;;  %v2304_v0 = vld [vmem:[#allocation4 + $0xa8] sm:$0xff]   ;;  %v2330_v46 = vld [vmem:[#allocation4 + $0x1f0] sm:$0xff]  }
  0x4a   :  { %510 = vmatpush1.bf16.msra.mxu0 %v2281_v47  ;;  %553 = vmatpush1.bf16.msra.mxu1 %v2284_v48 }
  0x4b   :  { %511 = vmatprep.subr.bf16.mxu0 %v2289_v49  ;;  %554 = vmatprep.subr.bf16.mxu1 %v2292_v50 }
  0x4e   :  { %512 = vmatpush1.bf16.msra.mxu0 %v2287_v51  ;;  %555 = vmatpush1.bf16.msra.mxu1 %v2290_v52  ;;  %v2331_v51 = vld [vmem:[#allocation4 + $0x130] sm:$0xff]  }
  0x4f   :  { %2037 = vmatprep.subr.bf16.mxu0 %v2293_v53  ;;  %2059 = vmatprep.subr.bf16.mxu1 %v2294_v54  ;;  %v2332_v52 = vld [vmem:[#allocation4 + $0x1b0] sm:$0xff]   ;;  %v2333_v53 = vld [vmem:[#allocation4 + $0x168] sm:$0xff]  }
  0x50   :  { %v2334_v54 = vld [vmem:[#allocation4 + $0x1e8] sm:$0xff]  }
  0x51   :  { %1920 = vmatmul.mubr.msk.bf16.vlgmr.msra.gmra.mxu0 %vm281_vm2, %v2546_v25  ;;  %1921 = vmatmul.mubr.msk.bf16.vlgmr.msra.gmra.mxu1 %vm281_vm2, %v2546_v25 }
  0x52   :  { %2038 = vmatpush3.bf16.msra.mxu0 %v2295_v55  ;;  %2060 = vmatpush3.bf16.msra.mxu1 %v2296_v56 }
  0x53   :  { %2039 = vmatprep.subr.bf16.mxu0 %v2297_v57  ;;  %2061 = vmatprep.subr.bf16.mxu1 %v2298_v58 }
  0x56   :  { %2040 = vmatpush3.bf16.msra.mxu0 %v2299_v59  ;;  %2062 = vmatpush3.bf16.msra.mxu1 %v2300_v60  ;;  %v2335_v59 = vld [vmem:[#allocation4 + $0x128] sm:$0xff]  }
  0x57   :  { %2041 = vmatprep.subr.bf16.mxu0 %v2301_v61  ;;  %2063 = vmatprep.subr.bf16.mxu1 %v2302_v62  ;;  %v2336_v60 = vld [vmem:[#allocation4 + $0x1a8] sm:$0xff]  }
  0x5a   :  { %2042 = vmatpush3.bf16.msra.mxu0 %v2303_v63  ;;  %2064 = vmatpush3.bf16.msra.mxu1 %v2304_v0  ;;  %v2337_v63 = vld [vmem:[#allocation4 + $0x160] sm:$0xff]  }
  0x5b   :  { %2043 = vmatprep.subr.bf16.mxu0 %v2305_v1  ;;  %2065 = vmatprep.subr.bf16.mxu1 %v2306_v2  ;;  %v2338_v0 = vld [vmem:[#allocation4 + $0x1e0] sm:$0xff]  }
  0x5e   :  { %2044 = vmatpush3.bf16.msra.mxu0 %v2307_v3  ;;  %2066 = vmatpush3.bf16.msra.mxu1 %v2308_v4  ;;  %v2339_v3 = vld [vmem:[#allocation4 + $0x120] sm:$0xff]  }
  0x5f   :  { %2045 = vmatprep.subr.bf16.mxu0 %v2309_v5  ;;  %2067 = vmatprep.subr.bf16.mxu1 %v2310_v6  ;;  %v2340_v4 = vld [vmem:[#allocation4 + $0x1a0] sm:$0xff]  }
  0x62   :  { %2046 = vmatpush3.bf16.msra.mxu0 %v2311_v7  ;;  %2068 = vmatpush3.bf16.msra.mxu1 %v2312_v8  ;;  %v2341_v7 = vld [vmem:[#allocation4 + $0x158] sm:$0xff]  }
  0x63   :  { %2047 = vmatprep.subr.bf16.mxu0 %v2313_v9  ;;  %2069 = vmatprep.subr.bf16.mxu1 %v2314_v10  ;;  %v2342_v8 = vld [vmem:[#allocation4 + $0x1d8] sm:$0xff]  }
  0x66   :  { %2048 = vmatpush3.bf16.msra.mxu0 %v2315_v11  ;;  %2070 = vmatpush3.bf16.msra.mxu1 %v2316_v12 }
  0x67   :  { %2049 = vmatprep.subr.bf16.mxu0 %v2317_v13  ;;  %2071 = vmatprep.subr.bf16.mxu1 %v2318_v14  ;;  %v2343_v13 = vld [vmem:[#allocation4 + $0x118] sm:$0xff]  }
  0x68   :  { %v2344_v14 = vld [vmem:[#allocation4 + $0x198] sm:$0xff]  }
  0x6a   :  { %2050 = vmatpush3.bf16.msra.mxu0 %v2319_v15  ;;  %2072 = vmatpush3.bf16.msra.mxu1 %v2320_v16  ;;  %v2345_v15 = vld [vmem:[#allocation4 + $0x150] sm:$0xff]  }
  0x6b   :  { %2051 = vmatprep.subr.bf16.mxu0 %v2321_v17  ;;  %2073 = vmatprep.subr.bf16.mxu1 %v2322_v18  ;;  %v2346_v16 = vld [vmem:[#allocation4 + $0x1d0] sm:$0xff]  }
  0x6e   :  { %2052 = vmatpush3.bf16.msra.mxu0 %v2323_v19  ;;  %2074 = vmatpush3.bf16.msra.mxu1 %v2324_v20  ;;  %v2347_v19 = vld [vmem:[#allocation4 + $0x110] sm:$0xff]  }
  0x6f   :  { %2081 = vmatprep.subr.bf16.mxu0 %v2325_v21  ;;  %2103 = vmatprep.subr.bf16.mxu1 %v2326_v22  ;;  %v2348_v20 = vld [vmem:[#allocation4 + $0x190] sm:$0xff]   ;;  %v2349_v21 = vld [vmem:[#allocation4 + $0x148] sm:$0xff]  }
  0x70   :  { %v2350_v22 = vld [vmem:[#allocation4 + $0x1c8] sm:$0xff]  }
  0xf9   :  { %v359_v23 = vpop.f32.mrf.mxu0  ;;  %v402_v24 = vpop.f32.mrf.mxu1 }
  0xfb   :  { %v361_v25 = vpop.f32.mrf.mxu0  ;;  %v404_v26 = vpop.f32.mrf.mxu1 }
  0xfd   :  { %v363_v27 = vpop.f32.mrf.mxu0  ;;  %v406_v28 = vpop.f32.mrf.mxu1 }
  0xfe   :  { %v583_v29 = vpack.c.bf16 %v363_v27, %v359_v23  ;;  %v585_v30 = vpack.c.bf16 %v406_v28, %v402_v24 }
  0xff   :  { %v365_v31 = vpop.f32.mrf.mxu0  ;;  %v408_v32 = vpop.f32.mrf.mxu1 }
 0x100   :  { %v584_v33 = vpack.c.bf16 %v365_v31, %v361_v25  ;;  %v586_v34 = vpack.c.bf16 %v408_v32, %v404_v26  ;;  %v595_v35 = vmul.bf16 1009007652, %v583_v29  ;;  %v597_v36 = vmul.bf16 1009007652, %v585_v30  ;;  %v2351_v25 = vld [vmem:[#allocation4 + $0x108] sm:$0xff]  }
 0x101   :  { %v2352_v26 = vld [vmem:[#allocation4 + $0x188] sm:$0xff]  }
 0x102   :  { %v596_v37 = vmul.bf16 1009007652, %v584_v33  ;;  %v598_v38 = vmul.bf16 1009007652, %v586_v34  ;;  %v607_v43 = vmax.bf16 %v595_v35, %v583_v29  ;;  %v609_v44 = vmax.bf16 %v597_v36, %v585_v30  ;;  %v2353_v29 = vld [vmem:[#allocation4 + $0x140] sm:$0xff]  }
 0x103   :  { %v2354_v30 = vld [vmem:[#allocation4 + $0x1c0] sm:$0xff]  }
 0x104   :  { %v608_v39 = vmax.bf16 %v596_v37, %v584_v33  ;;  %v610_v40 = vmax.bf16 %v598_v38, %v586_v34  ;;  %v2355_v33 = vld [vmem:[#allocation4 + $0x100] sm:$0xff]   ;;  %v2357_v37 = vld [vmem:[#allocation4 + $0x278] sm:$0xff]  }
 0x105   :  { %v2571_v47 = vpop.f32.mrf.mxu0  ;;  %v2573_v48 = vpop.f32.mrf.mxu1  ;;  %v2356_v34 = vld [vmem:[#allocation4 + $0x180] sm:$0xff]   ;;  %v2358_v38 = vld [vmem:[#allocation4 + $0x2f8] sm:$0xff]  }
 0x106   :  { %1426 = vmatprep.mubr.bf16.mxu0 %v608_v39  ;;  %1467 = vmatprep.mubr.bf16.mxu1 %v610_v40 }
 0x107   :  { %1427 = vmatmul.mubr.bf16.vlgmr.msra.gmra.mxu0 %v607_v43  ;;  %1468 = vmatmul.mubr.bf16.vlgmr.msra.gmra.mxu1 %v609_v44  ;;  %v447_v49 = vpop.f32.mrf.mxu0  ;;  %v490_v50 = vpop.f32.mrf.mxu1 }
 0x108   :  { %2082 = vmatpush3.bf16.msra.mxu0 %v2327_v41  ;;  %2104 = vmatpush3.bf16.msra.mxu1 %v2328_v42  ;;  %v2359_v41 = vld [vmem:[#allocation4 + $0x238] sm:$0xff]  }
 0x109   :  { %2083 = vmatprep.subr.bf16.mxu0 %v2329_v45  ;;  %2105 = vmatprep.subr.bf16.mxu1 %v2330_v46  ;;  %v449_v55 = vpop.f32.mrf.mxu0  ;;  %v492_v56 = vpop.f32.mrf.mxu1  ;;  %v2360_v42 = vld [vmem:[#allocation4 + $0x2b8] sm:$0xff]   ;;  %v2361_v45 = vld [vmem:[#allocation4 + $0x270] sm:$0xff]  }
 0x10a   :  { %v587_v27 = vpack.c.bf16 %v449_v55, %v2571_v47  ;;  %v589_v28 = vpack.c.bf16 %v492_v56, %v2573_v48  ;;  %v2362_v46 = vld [vmem:[#allocation4 + $0x2f0] sm:$0xff]   ;;  %v2369_v55 = vld [vmem:[#allocation4 + $0x260] sm:$0xff]  }
 0x10b   :  { %v451_v57 = vpop.f32.mrf.mxu0  ;;  %v494_v58 = vpop.f32.mrf.mxu1  ;;  %v2370_v56 = vld [vmem:[#allocation4 + $0x2e0] sm:$0xff]  }
 0x10c   :  { %2084 = vmatpush3.bf16.msra.mxu0 %v2331_v51  ;;  %2106 = vmatpush3.bf16.msra.mxu1 %v2332_v52  ;;  %v588_v61 = vpack.c.bf16 %v451_v57, %v447_v49  ;;  %v590_v62 = vpack.c.bf16 %v494_v58, %v490_v50  ;;  %v599_v35 = vmul.bf16 1009007652, %v587_v27  ;;  %v601_v36 = vmul.bf16 1009007652, %v589_v28  ;;  %v2363_v49 = vld [vmem:[#allocation4 + $0x230] sm:$0xff]   ;;  %v2365_v51 = vld [vmem:[#allocation4 + $0x268] sm:$0xff]  }
 0x10d   :  { %2085 = vmatprep.subr.bf16.mxu0 %v2333_v53  ;;  %2107 = vmatprep.subr.bf16.mxu1 %v2334_v54  ;;  %v2364_v50 = vld [vmem:[#allocation4 + $0x2b0] sm:$0xff]   ;;  %v2366_v52 = vld [vmem:[#allocation4 + $0x2e8] sm:$0xff]   ;;  %v2371_v57 = vld [vmem:[#allocation4 + $0x220] sm:$0xff]  }
 0x10e   :  { %v600_v1 = vmul.bf16 1009007652, %v588_v61  ;;  %v602_v2 = vmul.bf16 1009007652, %v590_v62  ;;  %v611_v43 = vmax.bf16 %v599_v35, %v587_v27  ;;  %v613_v44 = vmax.bf16 %v601_v36, %v589_v28  ;;  %v2367_v53 = vld [vmem:[#allocation4 + $0x228] sm:$0xff]   ;;  %v2372_v58 = vld [vmem:[#allocation4 + $0x2a0] sm:$0xff]  }
 0x10f   :  { %v2368_v54 = vld [vmem:[#allocation4 + $0x2a8] sm:$0xff]   ;;  %v2398_v27 = vld [vmem:[%s2673_s6 + $0x30] sm:$0xff]  }
 0x110   :  { %2086 = vmatpush3.bf16.msra.mxu0 %v2335_v59  ;;  %2108 = vmatpush3.bf16.msra.mxu1 %v2336_v60  ;;  %v612_v5 = vmax.bf16 %v600_v1, %v588_v61  ;;  %v614_v6 = vmax.bf16 %v602_v2, %v590_v62  ;;  %v2373_v59 = vld [vmem:[#allocation4 + $0x258] sm:$0xff]   ;;  %v2379_v1 = vld [vmem:[#allocation4 + $0x210] sm:$0xff]   ;;  %v2399_v28 = vld [vmem:[%s2673_s6 + $0x28] sm:$0xff]  }
 0x111   :  { %2087 = vmatprep.subr.bf16.mxu0 %v2337_v63  ;;  %2109 = vmatprep.subr.bf16.mxu1 %v2338_v0  ;;  %v2575_v9 = vpop.f32.mrf.mxu0  ;;  %v2577_v10 = vpop.f32.mrf.mxu1  ;;  %v2374_v60 = vld [vmem:[#allocation4 + $0x2d8] sm:$0xff]   ;;  %v2377_v63 = vld [vmem:[#allocation4 + $0x250] sm:$0xff]  }
 0x112   :  { %1508 = vmatprep.mubr.bf16.mxu0 %v612_v5  ;;  %1549 = vmatprep.mubr.bf16.mxu1 %v614_v6  ;;  %v2375_v61 = vld [vmem:[#allocation4 + $0x218] sm:$0xff]   ;;  %v2378_v0 = vld [vmem:[#allocation4 + $0x2d0] sm:$0xff]   ;;  %v2383_v5 = vld [vmem:[#allocation4 + $0x208] sm:$0xff]  }
 0x113   :  { %v533_v11 = vpop.f32.mrf.mxu0  ;;  %v576_v12 = vpop.f32.mrf.mxu1  ;;  %v2376_v62 = vld [vmem:[#allocation4 + $0x298] sm:$0xff]   ;;  %v2380_v2 = vld [vmem:[#allocation4 + $0x290] sm:$0xff]   ;;  %v2384_v6 = vld [vmem:[#allocation4 + $0x288] sm:$0xff]  }
 0x114   :  { %2088 = vmatpush3.bf16.msra.mxu0 %v2339_v3  ;;  %2110 = vmatpush3.bf16.msra.mxu1 %v2340_v4  ;;  %v2381_v3 = vld [vmem:[#allocation4 + $0x248] sm:$0xff]  }
 0x115   :  { %2089 = vmatprep.subr.bf16.mxu0 %v2341_v7  ;;  %2111 = vmatprep.subr.bf16.mxu1 %v2342_v8  ;;  %v2579_v17 = vpop.f32.mrf.mxu0  ;;  %v2581_v18 = vpop.f32.mrf.mxu1  ;;  %v2382_v4 = vld [vmem:[#allocation4 + $0x2c8] sm:$0xff]  }
 0x116   :  { %v591_v7 = vpack.c.bf16 %v2579_v17, %v2575_v9  ;;  %v593_v8 = vpack.c.bf16 %v2581_v18, %v2577_v10  ;;  %v2389_v9 = vld [vmem:[%s2671_s4 + $0x38] sm:$0xff]   ;;  %v2478_v10 = vmov 0.0   ;;  %v2390_v17 = vld [vmem:[%s2671_s4 + $0x30] sm:$0xff]   ;;  %v2391_v18 = vld [vmem:[%s2671_s4 + $0x28] sm:$0xff]  }
 0x117   :  { %v537_v23 = vpop.f32.mrf.mxu0  ;;  %v580_v24 = vpop.f32.mrf.mxu1 }
 0x118   :  { %2090 = vmatpush3.bf16.msra.mxu0 %v2343_v13  ;;  %2112 = vmatpush3.bf16.msra.mxu1 %v2344_v14  ;;  %v592_v31 = vpack.c.bf16 %v537_v23, %v533_v11  ;;  %v594_v32 = vpack.c.bf16 %v580_v24, %v576_v12  ;;  %v2385_v11 = vld [vmem:[#allocation4 + $0x240] sm:$0xff]   ;;  %v2394_v23 = vld [vmem:[%s2671_s4 + $0x10] sm:$0xff]   ;;  %v2395_v24 = vld [vmem:[%s2671_s4 + $0x8] sm:$0xff]  }
 0x119   :  { %2091 = vmatprep.subr.bf16.mxu0 %v2345_v15  ;;  %2113 = vmatprep.subr.bf16.mxu1 %v2346_v16  ;;  %v2386_v12 = vld [vmem:[#allocation4 + $0x2c0] sm:$0xff]   ;;  %v603_v15 = vmul.bf16 1009007652, %v591_v7  ;;  %v605_v16 = vmul.bf16 1009007652, %v593_v8 }
 0x11a   :  { %v604_v39 = vmul.bf16 1009007652, %v592_v31  ;;  %v606_v40 = vmul.bf16 1009007652, %v594_v32  ;;  %v2387_v13 = vld [vmem:[#allocation4 + $0x200] sm:$0xff]  }
 0x11b   :  { %v2388_v14 = vld [vmem:[#allocation4 + $0x280] sm:$0xff]  }
 0x11c   :  { %2092 = vmatpush3.bf16.msra.mxu0 %v2347_v19  ;;  %2114 = vmatpush3.bf16.msra.mxu1 %v2348_v20  ;;  %v616_v47 = vmax.bf16 %v604_v39, %v592_v31  ;;  %v618_v48 = vmax.bf16 %v606_v40, %v594_v32  ;;  %v615_v19 = vmax.bf16 %v603_v15, %v591_v7 }
 0x11d   :  { %2093 = vmatprep.subr.bf16.mxu0 %v2349_v21  ;;  %2115 = vmatprep.subr.bf16.mxu1 %v2350_v22  ;;  %v617_v20 = vmax.bf16 %v605_v16, %v593_v8  ;;  %v2392_v21 = vld [vmem:[%s2671_s4 + $0x20] sm:$0xff]   ;;  %v2393_v22 = vld [vmem:[%s2671_s4 + $0x18] sm:$0xff]  }
 0x120   :  { %2094 = vmatpush3.bf16.msra.mxu0 %v2351_v25  ;;  %2116 = vmatpush3.bf16.msra.mxu1 %v2352_v26  ;;  %v2396_v25 = vld [vmem:[%s2671_s4] sm:$0xff]   ;;  %v2397_v26 = vld [vmem:[%s2673_s6 + $0x38] sm:$0xff]  }
 0x121   :  { %2095 = vmatprep.subr.bf16.mxu0 %v2353_v29  ;;  %2117 = vmatprep.subr.bf16.mxu1 %v2354_v30  ;;  %v2400_v29 = vld [vmem:[%s2673_s6 + $0x20] sm:$0xff]   ;;  %v2401_v30 = vld [vmem:[%s2673_s6 + $0x18] sm:$0xff]  }
 0x124   :  { %2096 = vmatpush3.bf16.msra.mxu0 %v2355_v33  ;;  %2118 = vmatpush3.bf16.msra.mxu1 %v2356_v34 }
 0x125   :  { %2125 = vmatprep.subr.bf16.mxu0 %v2357_v37  ;;  %2147 = vmatprep.subr.bf16.mxu1 %v2358_v38 }
 0x127   :  { %1509 = vmatmul.mubr.bf16.vlgmr.msra.gmra.mxu0 %v611_v43  ;;  %1550 = vmatmul.mubr.bf16.vlgmr.msra.gmra.mxu1 %v613_v44  ;;  %v1922_v43 = vld [vmem:[%s2670_s3] ss:$0 sm:$0xff] }
 0x128   :  { %2126 = vmatpush3.bf16.msra.mxu0 %v2359_v41  ;;  %2148 = vmatpush3.bf16.msra.mxu1 %v2360_v42 }
 0x129   :  { %2127 = vmatprep.subr.bf16.mxu0 %v2361_v45  ;;  %2149 = vmatprep.subr.bf16.mxu1 %v2362_v46 }
 0x12a   :  { %1590 = vmatprep.mubr.bf16.mxu0 %v616_v47  ;;  %1631 = vmatprep.mubr.bf16.mxu1 %v618_v48 }
 0x12c   :  { %2128 = vmatpush3.bf16.msra.mxu0 %v2363_v49  ;;  %2150 = vmatpush3.bf16.msra.mxu1 %v2364_v50 }
 0x12d   :  { %2129 = vmatprep.subr.bf16.mxu0 %v2365_v51  ;;  %2151 = vmatprep.subr.bf16.mxu1 %v2366_v52 }
 0x130   :  { %2130 = vmatpush3.bf16.msra.mxu0 %v2367_v53  ;;  %2152 = vmatpush3.bf16.msra.mxu1 %v2368_v54 }
 0x131   :  { %2131 = vmatprep.subr.bf16.mxu0 %v2369_v55  ;;  %2153 = vmatprep.subr.bf16.mxu1 %v2370_v56 }
 0x134   :  { %2132 = vmatpush3.bf16.msra.mxu0 %v2371_v57  ;;  %2154 = vmatpush3.bf16.msra.mxu1 %v2372_v58 }
 0x135   :  { %2133 = vmatprep.subr.bf16.mxu0 %v2373_v59  ;;  %2155 = vmatprep.subr.bf16.mxu1 %v2374_v60 }
 0x138   :  { %2134 = vmatpush3.bf16.msra.mxu0 %v2375_v61  ;;  %2156 = vmatpush3.bf16.msra.mxu1 %v2376_v62 }
 0x139   :  { %2135 = vmatprep.subr.bf16.mxu0 %v2377_v63  ;;  %2157 = vmatprep.subr.bf16.mxu1 %v2378_v0 }
 0x13c   :  { %2136 = vmatpush3.bf16.msra.mxu0 %v2379_v1  ;;  %2158 = vmatpush3.bf16.msra.mxu1 %v2380_v2 }
 0x13d   :  { %2137 = vmatprep.subr.bf16.mxu0 %v2381_v3  ;;  %2159 = vmatprep.subr.bf16.mxu1 %v2382_v4 }
 0x140   :  { %2138 = vmatpush3.bf16.msra.mxu0 %v2383_v5  ;;  %2160 = vmatpush3.bf16.msra.mxu1 %v2384_v6 }
 0x141   :  { %2139 = vmatprep.subr.bf16.mxu0 %v2385_v11  ;;  %2161 = vmatprep.subr.bf16.mxu1 %v2386_v12 }
 0x144   :  { %2140 = vmatpush3.bf16.msra.mxu0 %v2387_v13  ;;  %2162 = vmatpush3.bf16.msra.mxu1 %v2388_v14 }
 0x145   :  { %2187 = vmatprep.subr.bf16.mxu0 %v2478_v10  ;;  %2207 = vmatprep.subr.bf16.mxu1 %v2478_v10 }
 0x147   :  { %1591 = vmatmul.mubr.bf16.vlgmr.msra.gmra.mxu0 %v615_v19  ;;  %1632 = vmatmul.mubr.bf16.vlgmr.msra.gmra.mxu1 %v617_v20 }
 0x148   :  { %2188 = vmatpush3.bf16.msra.mxu0 %v2389_v9  ;;  %2203 = vmatprep.mubr.msk.bf16.mxu0 %vm2479_vm3, %v2478_v10 }
 0x149   :  { %2189 = vmatprep.subr.bf16.mxu0 %v2478_v10  ;;  %2223 = vmatprep.mubr.msk.bf16.mxu1 %vm2479_vm3, %v2478_v10 }
 0x14a   :  { %2208 = vmatpush3.bf16.msra.mxu1 %v2397_v26 }
 0x14b   :  { %2209 = vmatprep.subr.bf16.mxu1 %v2478_v10 }
 0x14c   :  { %2190 = vmatpush3.bf16.msra.mxu0 %v2390_v17 }
 0x14d   :  { %2191 = vmatprep.subr.bf16.mxu0 %v2478_v10 }
 0x14e   :  { %2210 = vmatpush3.bf16.msra.mxu1 %v2398_v27 }
 0x14f   :  { %2211 = vmatprep.subr.bf16.mxu1 %v2478_v10 }
 0x150   :  { %2192 = vmatpush3.bf16.msra.mxu0 %v2391_v18  ;;  %v2402_v18 = vld [vmem:[%s2673_s6 + $0x10] sm:$0xff]  }
 0x151   :  { %2193 = vmatprep.subr.bf16.mxu0 %v2478_v10 }
 0x152   :  { %2212 = vmatpush3.bf16.msra.mxu1 %v2399_v28 }
 0x153   :  { %2213 = vmatprep.subr.bf16.mxu1 %v2478_v10 }
 0x154   :  { %2194 = vmatpush3.bf16.msra.mxu0 %v2392_v21  ;;  %v2403_v21 = vld [vmem:[%s2673_s6 + $0x8] sm:$0xff]  }
 0x155   :  { %2195 = vmatprep.subr.bf16.mxu0 %v2478_v10 }
 0x156   :  { %2214 = vmatpush3.bf16.msra.mxu1 %v2400_v29 }
 0x157   :  { %2215 = vmatprep.subr.bf16.mxu1 %v2478_v10 }
 0x158   :  { %2196 = vmatpush3.bf16.msra.mxu0 %v2393_v22  ;;  %v2404_v22 = vld [vmem:[%s2673_s6] sm:$0xff]  }
 0x159   :  { %2197 = vmatprep.subr.bf16.mxu0 %v2478_v10 }
 0x15a   :  { %2216 = vmatpush3.bf16.msra.mxu1 %v2401_v30 }
 0x15b   :  { %2217 = vmatprep.subr.bf16.mxu1 %v2478_v10 }
 0x15c   :  { %2198 = vmatpush3.bf16.msra.mxu0 %v2394_v23  ;;  %v2019_v23 = vld [vmem:[#allocation6] ss:$0 sm:$0xff] }
 0x15d   :  { %2199 = vmatprep.subr.bf16.mxu0 %v2478_v10 }
 0x15e   :  { %2218 = vmatpush3.bf16.msra.mxu1 %v2402_v18 }
 0x15f   :  { %2219 = vmatprep.subr.bf16.mxu1 %v2478_v10 }
 0x160   :  { %2200 = vmatpush3.bf16.msra.mxu0 %v2395_v24 }
 0x161   :  { %2201 = vmatprep.subr.bf16.mxu0 %v2478_v10 }
 0x162   :  { %2220 = vmatpush3.bf16.msra.mxu1 %v2403_v21 }
 0x163   :  { %2221 = vmatprep.subr.bf16.mxu1 %v2478_v10  ;;  %v2028_v10 = vld [vmem:[%s2674_s7] ss:$0 sm:$0xff] }
 0x164   :  { %2202 = vmatpush3.bf16.msra.mxu0 %v2396_v25 }
 0x166   :  { %2222 = vmatpush3.bf16.msra.mxu1 %v2404_v22 }
 0x1c7   :  { %v2053_v31 = vpop.f32.mrf.mxu0  ;;  %v2075_v32 = vpop.f32.mrf.mxu1 }
 0x1c9   :  { %v2054_v33 = vpop.f32.mrf.mxu0  ;;  %v2076_v34 = vpop.f32.mrf.mxu1 }
 0x1ca   :  { %v2055_v42 = vadd.f32 %v2054_v33, %v2053_v31  ;;  %v2077_v49 = vadd.f32 %v2076_v34, %v2075_v32 }
 0x1cb   :  { %v2056_v35 = vpop.f32.mrf.mxu0  ;;  %v2078_v36 = vpop.f32.mrf.mxu1 }
 0x1cc   :  { %v1429_v46 = vadd.f32 %v2055_v42, %v1922_v43 }
 0x1cd   :  { %v2057_v37 = vpop.f32.mrf.mxu0  ;;  %v2079_v38 = vpop.f32.mrf.mxu1 }
 0x1ce   :  { %v2058_v47 = vadd.f32 %v2057_v37, %v2056_v35  ;;  %v1470_v52 = vadd.f32 %v2077_v49, %v1429_v46  ;;  %v2080_v55 = vadd.f32 %v2079_v38, %v2078_v36 }
 0x1d0   :  { %v1432_v53 = vadd.f32 %v2058_v47, %v1922_v43 }
 0x1d2   :  { %v1473_v60 = vadd.f32 %v2080_v55, %v1432_v53 }
 0x1e7   :  { %v2097_v39 = vpop.f32.mrf.mxu0  ;;  %v2119_v40 = vpop.f32.mrf.mxu1 }
 0x1e9   :  { %v2098_v41 = vpop.f32.mrf.mxu0  ;;  %v2120_v44 = vpop.f32.mrf.mxu1 }
 0x1ea   :  { %v2099_v50 = vadd.f32 %v2098_v41, %v2097_v39  ;;  %v2121_v61 = vadd.f32 %v2120_v44, %v2119_v40 }
 0x1eb   :  { %v2100_v45 = vpop.f32.mrf.mxu0  ;;  %v2122_v48 = vpop.f32.mrf.mxu1 }
 0x1ec   :  { %v1511_v56 = vadd.f32 %v2099_v50, %v1470_v52 }
 0x1ed   :  { %v2101_v51 = vpop.f32.mrf.mxu0  ;;  %v2123_v54 = vpop.f32.mrf.mxu1 }
 0x1ee   :  { %v2102_v57 = vadd.f32 %v2101_v51, %v2100_v45  ;;  %v1552_v0 = vadd.f32 %v2121_v61, %v1511_v56  ;;  %v2124_v5 = vadd.f32 %v2123_v54, %v2122_v48 }
 0x1f0   :  { %v1514_v1 = vadd.f32 %v2102_v57, %v1473_v60 }
 0x1f2   :  { %v1555_v11 = vadd.f32 %v2124_v5, %v1514_v1 }
 0x207   :  { %v2141_v58 = vpop.f32.mrf.mxu0  ;;  %v2163_v59 = vpop.f32.mrf.mxu1 }
 0x209   :  { %v2142_v62 = vpop.f32.mrf.mxu0  ;;  %v2164_v63 = vpop.f32.mrf.mxu1 }
 0x20a   :  { %v2143_v2 = vadd.f32 %v2142_v62, %v2141_v58  ;;  %v2165_v12 = vadd.f32 %v2164_v63, %v2163_v59 }
 0x20b   :  { %v2144_v3 = vpop.f32.mrf.mxu0  ;;  %v2166_v4 = vpop.f32.mrf.mxu1 }
 0x20c   :  { %v1593_v6 = vadd.f32 %v2143_v2, %v1552_v0 }
 0x20d   :  { %v2145_v7 = vpop.f32.mrf.mxu0  ;;  %v2167_v8 = vpop.f32.mrf.mxu1 }
 0x20e   :  { %v2146_v13 = vadd.f32 %v2145_v7, %v2144_v3  ;;  %v1634_v14 = vadd.f32 %v2165_v12, %v1593_v6  ;;  %v2168_v16 = vadd.f32 %v2167_v8, %v2166_v4 }
 0x210   :  { %v1596_v15 = vadd.f32 %v2146_v13, %v1555_v11  ;;  %v1640_v20 = vmax.f32 %v1634_v14, 0.0 }
 0x212   :  { %v1637_v19 = vadd.f32 %v2168_v16, %v1596_v15 }
 0x214   :  { %v1641_v9 = vmax.f32 %v1637_v19, 0.0 }
 0x216   :  { %v1642_v17 = vpack.c.bf16 %v1641_v9, %v1640_v20 }
 0x218   :  { %2204 = vmatmul.mubr.bf16.vlgmr.msra.gmra.mxu0 %v1642_v17 }
 0x2d8   :  { %v1748_v24 = vpop.f32.mrf.mxu0 }
 0x2d9   :  { %v1749_v26 = vadd.f32 %v2019_v23, %v1748_v24 }
 0x2da   :  { %v2205_v25 = vpop.f32.mrf.mxu0 }
 0x2db   :  { %v1755_v30 = vmax.f32 %v1749_v26, 0.0 }
 0x2dc   :  { %v1751_v27 = vpop.f32.mrf.mxu0 }
 0x2dd   :  { %v1752_v28 = vadd.f32 %v2019_v23, %v1751_v27 }
 0x2de   :  { %v2206_v29 = vpop.f32.mrf.mxu0 }
 0x2df   :  { %v1756_v31 = vmax.f32 %v1752_v28, 0.0 }
 0x2e1   :  { %v1757_v32 = vpack.c.bf16 %v1756_v31, %v1755_v30 }
 0x2e3   :  { %2224 = vmatmul.mubr.bf16.vlgmr.msra.gmra.mxu1 %v1757_v32 }
 0x3a3   :  { %v1863_v33 = vpop.f32.mrf.mxu1 }
 0x3a4   :  { %v1864_v34 = vadd.f32 %v2028_v10, %v1863_v33 }
 0x3a5   :  { %v2225_v35 = vpop.f32.mrf.mxu1 }
 0x3a6   :  { %1871 = vst.msk [vmem:[%s2675_s8] sm:$0xff] %vm1870_vm4, %v1864_v34 }
 0x3a7   :  { %v1866_v36 = vpop.f32.mrf.mxu1 }
 0x3a8   :  { %v1867_v37 = vadd.f32 %v2028_v10, %v1866_v36 }
 0x3a9   :  { %v2226_v38 = vpop.f32.mrf.mxu1 }
 0x3aa   :  { %1872 = vst.msk [vmem:[%s2675_s8 + $0x8] sm:$0xff] %vm1870_vm4, %v1867_v37 }
 0x3ab   :  { %1877 = vsyncpa [#allocation3], 1 }
 0x3ac   :  { %1878 = vsyncpa [#allocation5], 1 }

</bundles_post_ra>
